<compile_context>
chip_gen: v7x
topology: tpu7x:2x2x1
jax: 0.10.0
libtpu: 0.0.40
codegen_flags: <defaults>
</compile_context>

<pallas_src>
import jax
import jax.numpy as jnp
import numpy as np
from jax.experimental import pallas as pl
from jax.experimental.pallas import tpu as pltpu

EPS = 1e-10  # matches nn.InstanceNorm2d(eps=1e-10) in the module


def dnn_kernel(x_ref, w0_ref, w2_ref, gamma_ref, beta_ref, o_ref):
    # x_ref:     (N*CI, HW)   bf16  VMEM   batch folded onto sublanes, pixels on lanes
    # w0_ref:    (N*CI, N*CI) f32   VMEM   block-diagonal conv0 weight
    # w2_ref:    (N*CO, N*CI) f32   VMEM   block-diagonal conv2 weight
    # gamma_ref: (N*CI, 1)    f32   VMEM
    # beta_ref:  (N*CI, 1)    f32   VMEM
    # o_ref:     (N*CO, HW)   f32   VMEM
    x = x_ref[...].astype(jnp.float32)                                   # (N*CI, HW)

    # l0: 1x1 conv == block-diagonal matmul on the MXU.
    y0 = jnp.dot(w0_ref[...], x, preferred_element_type=jnp.float32)    # (N*CI, HW)

    # l1: per-(sample, channel) InstanceNorm stats over the lane (pixel) axis,
    # two-pass variance, folded into an affine y1 = (y0 - mean) * s + beta.
    mean = jnp.mean(y0, axis=-1, keepdims=True)                          # (N*CI, 1)
    cent = y0 - mean
    var = jnp.mean(cent * cent, axis=-1, keepdims=True)                  # (N*CI, 1)
    scale = gamma_ref[...] * jax.lax.rsqrt(var + EPS)                    # (N*CI, 1)
    y1 = cent * scale + beta_ref[...]                                    # (N*CI, HW)

    # l2: 1x1 conv == block-diagonal matmul; result is already in (N*CO, HW)
    # store layout -> single lane-dense, unmasked store.
    o_ref[...] = jnp.dot(w2_ref[...], y1, preferred_element_type=jnp.float32)


def dnn_forward(x_nchw, w0, gamma, beta, w2):
    """x_nchw: (N, CI, H, W) bf16; w0: (CI, CI, 1, 1); w2: (CO, CI, 1, 1)."""
    N, CI_, H, W = x_nchw.shape
    CO_ = w2.shape[0]
    HW = H * W

    # Free reshapes only (no transposes): fold N onto the channel/sublane axis.
    x2 = x_nchw.reshape(N * CI_, HW)                                     # (N*CI, HW)

    eye_n = jnp.eye(N, dtype=jnp.float32)
    w0_bd = jnp.kron(eye_n, w0[:, :, 0, 0].astype(jnp.float32))          # (N*CI, N*CI)
    w2_bd = jnp.kron(eye_n, w2[:, :, 0, 0].astype(jnp.float32))          # (N*CO, N*CI)
    g2 = jnp.tile(gamma.astype(jnp.float32).reshape(CI_, 1), (N, 1))     # (N*CI, 1)
    b2 = jnp.tile(beta.astype(jnp.float32).reshape(CI_, 1), (N, 1))      # (N*CI, 1)

    vmem = pl.BlockSpec(memory_space=pltpu.MemorySpace.VMEM)

    out = pl.pallas_call(
        dnn_kernel,
        out_shape=jax.ShapeDtypeStruct((N * CO_, HW), jnp.float32),
        in_specs=[vmem, vmem, vmem, vmem, vmem],
        out_specs=vmem,
    )(x2, w0_bd, w2_bd, g2, b2)

    return out.reshape(N, CO_, H, W)                                     # free reshape back


def dnn_reference(x_nchw, w0, gamma, beta, w2):
    """Pure-JAX reference of the PyTorch forward (f32 math, two-pass stats)."""
    x = x_nchw.astype(jnp.float32)
    Ci = x.shape[1]
    w0m = w0[:, :, 0, 0].astype(jnp.float32)             # (CI, CI)
    w2m = w2[:, :, 0, 0].astype(jnp.float32)             # (CO, CI)
    y0 = jnp.einsum("oc,nchw->nohw", w0m, x)
    mean = jnp.mean(y0, axis=(2, 3), keepdims=True)
    var = jnp.mean((y0 - mean) ** 2, axis=(2, 3), keepdims=True)
    y1 = (y0 - mean) / jnp.sqrt(var + EPS)
    y1 = y1 * gamma.reshape(1, Ci, 1, 1) + beta.reshape(1, Ci, 1, 1)
    y2 = jnp.einsum("oc,nchw->nohw", w2m, y1)
    return y2.astype(jnp.float32)


if __name__ == "__main__":
    # small shapes consistent with the module: CI=4, CO=8, N=2, H=W=16
    N, CI, CO, H, W = 2, 4, 8, 16, 16

    key = jax.random.PRNGKey(0)
    kx, kw0, kw2, kg, kb = jax.random.split(key, 5)

    x = jax.random.normal(kx, (N, CI, H, W), dtype=jnp.float32).astype(jnp.bfloat16)
    # deterministic "kaiming-ish" conv weights (out, in, 1, 1), no bias
    w0 = jax.random.normal(kw0, (CI, CI, 1, 1), dtype=jnp.float32) * (1.0 / np.sqrt(CI))
    w2 = jax.random.normal(kw2, (CO, CI, 1, 1), dtype=jnp.float32) * (1.0 / np.sqrt(CI))
    # InstanceNorm2d(affine=True) params, perturbed so the affine path is exercised
    gamma = jnp.ones((CI,), jnp.float32) + 0.1 * jax.random.normal(kg, (CI,), dtype=jnp.float32)
    beta = 0.1 * jax.random.normal(kb, (CI,), dtype=jnp.float32)

    out = jax.block_until_ready(dnn_forward(x, w0, gamma, beta, w2))
    ref = jax.block_until_ready(dnn_reference(x, w0, gamma, beta, w2))

    assert out.shape == (N, CO, H, W) and out.dtype == jnp.float32
    np.testing.assert_allclose(np.asarray(out), np.asarray(ref), rtol=1e-2, atol=1e-2)

    print("KERNEL_OK")
</pallas_src>

<mosaic_0001>
module attributes {stable_mosaic.version = 11 : i64} {
  func.func @dnn_kernel(%arg0: memref<8x256xbf16, #tpu.memory_space<vmem>>, %arg1: memref<8x8xf32, #tpu.memory_space<vmem>>, %arg2: memref<16x8xf32, #tpu.memory_space<vmem>>, %arg3: memref<8x1xf32, #tpu.memory_space<vmem>>, %arg4: memref<8x1xf32, #tpu.memory_space<vmem>>, %arg5: memref<16x256xf32, #tpu.memory_space<vmem>>) attributes {dimension_semantics = [], scalar_prefetch = 0 : i64, scratch_operands = 0 : i64, tpu.core_type = #tpu.core_type<tc>} {
    %c0 = arith.constant 0 : index
    %c0_0 = arith.constant 0 : index
    %0 = vector.load %arg0[%c0, %c0_0] : memref<8x256xbf16, #tpu.memory_space<vmem>>, vector<8x256xbf16>
    %1 = arith.extf %0 : vector<8x256xbf16> to vector<8x256xf32>
    %c0_1 = arith.constant 0 : index
    %c0_2 = arith.constant 0 : index
    %2 = vector.load %arg1[%c0_1, %c0_2] : memref<8x8xf32, #tpu.memory_space<vmem>>, vector<8x8xf32>
    %cst = arith.constant dense<0.000000e+00> : vector<8x256xf32>
    %3 = tpu.matmul %2, %1, %cst {dimension_numbers = #tpu.dot_dimension_numbers<[1], [0], [0], [1], [0, 0, 1, 1], [], []>} : vector<8x8xf32>, vector<8x256xf32>, vector<8x256xf32> -> vector<8x256xf32>
    %cst_3 = arith.constant dense<0.000000e+00> : vector<8xf32>
    %4 = vector.multi_reduction <add>, %3, %cst_3 [1] : vector<8x256xf32> to vector<8xf32>
    %5 = vector.shape_cast %4 : vector<8xf32> to vector<8x1xf32>
    %cst_4 = arith.constant 2.560000e+02 : f32
    %6 = vector.broadcast %cst_4 : f32 to vector<8x1xf32>
    %7 = arith.divf %5, %6 : vector<8x1xf32>
    %8 = vector.broadcast %7 : vector<8x1xf32> to vector<8x256xf32>
    %9 = arith.subf %3, %8 : vector<8x256xf32>
    %10 = arith.mulf %9, %9 : vector<8x256xf32>
    %cst_5 = arith.constant dense<0.000000e+00> : vector<8xf32>
    %11 = vector.multi_reduction <add>, %10, %cst_5 [1] : vector<8x256xf32> to vector<8xf32>
    %12 = vector.shape_cast %11 : vector<8xf32> to vector<8x1xf32>
    %cst_6 = arith.constant 2.560000e+02 : f32
    %13 = vector.broadcast %cst_6 : f32 to vector<8x1xf32>
    %14 = arith.divf %12, %13 : vector<8x1xf32>
    %c0_7 = arith.constant 0 : index
    %c0_8 = arith.constant 0 : index
    %15 = vector.load %arg3[%c0_7, %c0_8] : memref<8x1xf32, #tpu.memory_space<vmem>>, vector<8x1xf32>
    %cst_9 = arith.constant 1.000000e-10 : f32
    %16 = vector.broadcast %cst_9 : f32 to vector<8x1xf32>
    %17 = arith.addf %14, %16 : vector<8x1xf32>
    %18 = math.rsqrt %17 : vector<8x1xf32>
    %19 = arith.mulf %15, %18 : vector<8x1xf32>
    %20 = vector.broadcast %19 : vector<8x1xf32> to vector<8x256xf32>
    %21 = arith.mulf %9, %20 : vector<8x256xf32>
    %c0_10 = arith.constant 0 : index
    %c0_11 = arith.constant 0 : index
    %22 = vector.load %arg4[%c0_10, %c0_11] : memref<8x1xf32, #tpu.memory_space<vmem>>, vector<8x1xf32>
    %23 = vector.broadcast %22 : vector<8x1xf32> to vector<8x256xf32>
    %24 = arith.addf %21, %23 : vector<8x256xf32>
    %c0_12 = arith.constant 0 : index
    %c0_13 = arith.constant 0 : index
    %25 = vector.load %arg2[%c0_12, %c0_13] : memref<16x8xf32, #tpu.memory_space<vmem>>, vector<16x8xf32>
    %cst_14 = arith.constant dense<0.000000e+00> : vector<16x256xf32>
    %26 = tpu.matmul %25, %24, %cst_14 {dimension_numbers = #tpu.dot_dimension_numbers<[1], [0], [0], [1], [0, 0, 1, 1], [], []>} : vector<16x8xf32>, vector<8x256xf32>, vector<16x256xf32> -> vector<16x256xf32>
    %c0_15 = arith.constant 0 : index
    %c0_16 = arith.constant 0 : index
    %27 = vector.load %arg5[%c0_15, %c0_16] : memref<16x256xf32, #tpu.memory_space<vmem>>, vector<16x256xf32>
    tpu.vector_store %arg5[%c0_15, %c0_16], %26 {strides = array<i32>} : memref<16x256xf32, #tpu.memory_space<vmem>>, vector<16x256xf32>,
    return
  }
}

</mosaic_0001>

<bundles_post_ra>
// kernel: tpu_custom_call.1
= control target key start
LH: loop header
LB: loop body
LE: loop exit
PB: predicated region body
PF: predicated region fallthrough
CT: control target
= control target key end

     0   :  { %s341_s0 = inlined_call_operand.vmem [shape: bf16[8,256], index: 0, kind: input, shape index: {}]   ;;  %s342_s1 = inlined_call_operand.vmem [shape: f32[8,8], index: 1, kind: input, shape index: {}]   ;;  %s343_s2 = inlined_call_operand.vmem [shape: f32[16,8], index: 2, kind: input, shape index: {}]   ;;  %s344_s3 = inlined_call_operand.vmem [shape: f32[8,1], index: 3, kind: input, shape index: {}]   ;;  %s345_s4 = inlined_call_operand.vmem [shape: f32[8,1], index: 4, kind: input, shape index: {}]   ;;  %s346_s5 = inlined_call_operand.hbm [shape: f32[16,256], index: 5, kind: output, shape index: {}]  }
   0x1   :  { %v21_v0 = vld [vmem:[%s341_s0] sm:$0xff] }
   0x2   :  { %10 = vsyncpa [#allocation3], 0  ;;  %v23_v1 = vunpack.c.h.bf16 %v21_v0  ;;  %v22_v2 = vunpack.c.l.bf16 %v21_v0  ;;  %v273_v3 = vmov 0.0   ;;  %v24_v4 = vld [vmem:[%s342_s1] sm:$0xff]  ;;  %vm25_vm0 = vcmask 64512   ;;  %v133_v30 = vld [vmem:[%s343_s2 + $0x8] sm:$0xff] }
   0x3   :  { %93 = vmatprep.mubr.f32.mxu0 %v273_v3  ;;  %204 = vmatprep.mubr.f32.mxu1 %v273_v3  ;;  %v274_v15 = vmov 0   ;;  %v113_v19 = vld [vmem:[%s344_s3] sm:$0xff] }
   0x4   :  { %29 = vmatprep.subr.mxu0 %v23_v1  ;;  %245 = vset.pattern.permute.xlu1 %v274_v15  ;;  %v124_v22 = vld [vmem:[%s345_s4] sm:$0xff]  ;;  %s275_s4 = smov [#allocation2]  }
   0x5   :  { %30 = vmatpush1.msra.mxu0 %v22_v2  ;;  %246 = vset.pattern.permute.xlu0 %v274_v15  ;;  %v132_v29 = vld [vmem:[%s343_s2] sm:$0xff]  ;;  %s226_s27 = sshll.u32 %s275_s4, 4  ;;  %s227_s27 = int_to_ptr.vmem [resolvable:$true] %s226_s27 }
   0x6   :  { %237 = vmatmul.mubr.msk.f32.vlgmr.msra.gmra.mrb[0].mxu0 %vm25_vm0, %v24_v4  ;;  %s249_s28 = scalar_lea.vmem %s227_s27, 512  ;;  %p254_p1 = scmp.lt.s32.totalorder %s227_s27, %s227_s27 }
   0x7   :  { %p250_p0 = scmp.ne.s32.totalorder %s227_s27, %s249_s28  ;;  %p255_p2 = scmp.lt.s32.totalorder %s249_s28, %s249_s28 }
   0x9   :  { %p256_p3 = por %p255_p2, %p254_p1 }
   0xb   :  { %p257_p4 = pnand %p256_p3, %p250_p0 }
  0xd9   :  { %v95_v5 = vpop.f32.mrb[0].mxu0 }
  0xda   :  { %v97_v6 = vpop.f32.mrb[1].mxu0 }
  0xdb   :  { %v100_v7 = vadd.f32 %v97_v6, %v95_v5 }
  0xdd   :  { %101 = vadd.xlane.f32.xlu0 %v100_v7 }
 0x16a   :  { %v102_v8 = vpop.xlane.xlu0 %101 }
 0x16b   :  { %v104_v9 = vmul.f32 0.00390625, %v102_v8 }
 0x16d   :  { %v105_v10 = vsub.f32 %v95_v5, %v104_v9  ;;  %v106_v11 = vsub.f32 %v97_v6, %v104_v9 }
 0x16f   :  { %v107_v12 = vmul.f32 %v105_v10, %v105_v10  ;;  %v108_v13 = vmul.f32 %v106_v11, %v106_v11 }
 0x171   :  { %v109_v14 = vadd.f32 %v108_v13, %v107_v12 }
 0x173   :  { %110 = vadd.xlane.f32.xlu0 %v109_v14 }
 0x200   :  { %v111_v16 = vpop.xlane.xlu0 %110 }
 0x201   :  { %v112_v17 = vmul.f32 0.00390625, %v111_v16 }
 0x203   :  { %v114_v18 = vadd.f32 1e-10, %v112_v17 }
 0x205   :  { %247 = vrsqrt.f32 %v114_v18 }
 0x20f   :  { %v248_v20 = vpop.eup %247 }
 0x210   :  { %v116_v21 = vmul.f32 %v248_v20, %v113_v19 }
 0x212   :  { %119 = vperm.xlu1 %245, %v116_v21  }
 0x216   :  { %127 = vperm.xlu1 %245, %v124_v22  }
 0x291   :  { %v120_v23 = vpop.permute.xlu1 %119 }
 0x292   :  { %v122_v24 = vmul.f32 %v120_v23, %v105_v10  ;;  %v123_v25 = vmul.f32 %v120_v23, %v106_v11 }
 0x295   :  { %v128_v26 = vpop.permute.xlu1 %127 }
 0x296   :  { %v130_v27 = vadd.f32 %v128_v26, %v122_v24  ;;  %v131_v28 = vadd.f32 %v128_v26, %v123_v25 }
 0x298   :  { %140 = vmatprep.subr.mxu1 %v131_v28 }
 0x299   :  { %141 = vmatpush1.msra.mxu1 %v130_v27 }
 0x29a   :  { %238 = vmatmul.mubr.msk.f32.vlgmr.msra.gmra.mrb[0].mxu1 %vm25_vm0, %v132_v29 }
 0x29b   :  { %210 = vmatprep.mubr.f32.mxu1 %v273_v3 }
 0x29e   :  { %239 = vmatmul.mubr.msk.f32.gmra.mrb[2].mxu1 %vm25_vm0, %v133_v30 }
 0x36d   :  { %v206_v31 = vpop.f32.mrb[0].mxu1 }
 0x36e   :  { %217 = vst [vmem:[#allocation2] sm:$0xff] %v206_v31  ;;  %v208_v32 = vpop.f32.mrb[1].mxu1 }
 0x36f   :  { %218 = vst [vmem:[#allocation2 + $0x8] sm:$0xff] %v208_v32 }
 0x371   :  { %v212_v33 = vpop.f32.mrb[2].mxu1 }
 0x372   :  { %219 = vst [vmem:[#allocation2 + $0x10] sm:$0xff] %v212_v33  ;;  %v214_v34 = vpop.f32.mrb[3].mxu1 }
 0x373   :  { %220 = vst [vmem:[#allocation2 + $0x18] sm:$0xff] %v214_v34 }
 0x374   :  { %260 = shalt.err (!%p257_p4)
}
 0x375   :  { %s261_s30 = scalar_lea.hbm %s346_s5, 512 }
 0x376   :  { %p262_p5 = scmp.ne.s32.totalorder %s346_s5, %s261_s30  ;;  %p265_p6 = scmp.lt.u32.totalorder %s261_s30, %s346_s5 }
 0x378   :  { %p267_p7 = pnand %p265_p6, %p262_p5 }
 0x37a   :  { %270 = shalt.err (!%p267_p7)
}
 0x37b   :  { %s276_s10 = smov 256   ;;  %s277_s11 = smov 16  }
 0x37c   :  { %232 = dma.vmem_to_hbm [thread:$0]  %s227_s27, 512, %s346_s5, [#allocation3], %s276_s10, %s276_s10, %s277_s11  }
 0x37d   :  { %271 = dma.done.wait [#allocation3], 512  }
 0x37e   :  { %272 = vsyncadd [#allocation3], 4294966784 }
 0x37f   :  { %236 = vsyncpa [#allocation3], 1 }

</bundles_post_ra>
